<compile_context>
chip_gen: v5e
topology: v5e:2x2
jax: 0.10.0
libtpu: 0.0.40
codegen_flags: <defaults>
</compile_context>

<pallas_src>
import functools

import jax
import jax.numpy as jnp
from jax import lax
from jax.experimental import pallas as pl
from jax.experimental.pallas import tpu as pltpu


@functools.lru_cache(maxsize=None)
def _vmem_budget():
    """Per-generation scoped-VMEM budget (bytes), conservative fallback = 32 MiB."""
    default = 32 * 1024 * 1024
    try:
        info = pltpu.get_tpu_info()
        cap = getattr(info, "vmem_capacity_bytes", None)
        if not cap:
            return default
        # ~3/4 of physical, capped at 100 MiB: v5e/v6e (128 MiB) -> 96 MiB, v7x (64 MiB) -> 48 MiB.
        return max(default, min(int(cap) * 3 // 4, 100 * 1024 * 1024))
    except Exception:
        return default


def _batch_block(batch, target=8):
    """Largest divisor of `batch` that is <= target (batches per grid step)."""
    bb = min(batch, target)
    while batch % bb:
        bb -= 1
    return bb


# ---------------- 1) fused first-linear + multi-head attention ---------------- #

def _mha_kernel(he_ref, tok_ref, mask_ref, wl_ref, bl_ref, wq_ref, bq_ref,
                wkv_ref, bkv_ref, wo_ref, bo_ref, h_ref, *, num_heads, scale):
    bb, E, _ = he_ref.shape
    T = tok_ref.shape[1]
    H = wq_ref.shape[0]
    d = H // num_heads
    bf16 = jnp.bfloat16

    # Flatten the batch block so every projection matmul has bb*E / bb*T MXU rows.
    he = jnp.maximum(he_ref[...], 0.0).reshape(bb * E, -1).astype(bf16)   # (bb*E, CLS)
    tok = tok_ref[...].reshape(bb * T, H).astype(bf16)                    # (bb*T, H)

    # e = Linear(relu(h_entity))   (first linear fused into this kernel)
    e = jnp.dot(he, wl_ref[...], preferred_element_type=jnp.float32) + bl_ref[...]   # (bb*E, H) f32

    # Q projection (scale folded into q, not the ExT score tile) + fused K|V projection.
    q = ((jnp.dot(e.astype(bf16), wq_ref[...], preferred_element_type=jnp.float32)
          + bq_ref[...]) * scale).astype(bf16)                                        # (bb*E, H)
    kv = (jnp.dot(tok, wkv_ref[...], preferred_element_type=jnp.float32)
          + bkv_ref[...])                                                             # (bb*T, 2H) f32
    k = kv[:, :H].astype(bf16)
    v = kv[:, H:].astype(bf16)
    wo = wo_ref[...]                                                                  # (H, H) bf16
    bo = bo_ref[...]                                                                  # (1, H) f32

    for b in range(bb):
        e_b = e[b * E:(b + 1) * E, :]
        q_b = q[b * E:(b + 1) * E, :]
        k_b = k[b * T:(b + 1) * T, :]
        v_b = v[b * T:(b + 1) * T, :]
        m_b = jnp.broadcast_to(mask_ref[b], (E, T))          # hoisted out of the head loop
        acc = jnp.zeros((E, H), jnp.float32)
        for hd in range(num_heads):
            sl = slice(hd * d, (hd + 1) * d)
            # QK^T without materializing a transpose: contract dim 1 of both operands.
            s = lax.dot_general(q_b[:, sl], k_b[:, sl], (((1,), (1,)), ((), ())),
                                preferred_element_type=jnp.float32) + m_b             # (E, T)
            s = s - jnp.max(s, axis=-1, keepdims=True)
            p = jnp.exp(s)
            p = p * pl.reciprocal(jnp.sum(p, axis=-1, keepdims=True), approx=True)
            ctx = jnp.dot(p.astype(bf16), v_b[:, sl],
                          preferred_element_type=jnp.float32)                          # (E, d)
            # Accumulate straight into the out-projection result (no per-head concat).
            acc = acc + jnp.dot(ctx.astype(bf16), wo[sl, :],
                                preferred_element_type=jnp.float32)                    # (E, H)
        # Residual add, lane-dense store over the full hidden width.
        h_ref[b] = (e_b + acc + bo).astype(h_ref.dtype)


def fused_linear_mha(h_entity, h_token, addmask, wl, bl, wq, bq, wkv, bkv, wo, bo,
                     *, num_heads, scale):
    """h_entity: [B,E,CLS], h_token: [B,T,H], addmask: [B,1,T] additive -> h: [B,E,H]."""
    B, E, CLS = h_entity.shape
    T = h_token.shape[1]
    H = wq.shape[0]
    bb = _batch_block(B)
    kern = functools.partial(_mha_kernel, num_heads=num_heads, scale=scale)
    return pl.pallas_call(
        kern,
        out_shape=jax.ShapeDtypeStruct((B, E, H), h_entity.dtype),
        grid=(B // bb,),
        in_specs=[
            pl.BlockSpec((bb, E, CLS), lambda b: (b, 0, 0)),      # h_entity
            pl.BlockSpec((bb, T, H), lambda b: (b, 0, 0)),        # h_token
            pl.BlockSpec((bb, 1, T), lambda b: (b, 0, 0)),        # additive mask
            pl.BlockSpec((CLS, H), lambda b: (0, 0)),             # w_lin (bf16)
            pl.BlockSpec((1, H), lambda b: (0, 0)),               # b_lin
            pl.BlockSpec((H, H), lambda b: (0, 0)),               # wq (bf16)
            pl.BlockSpec((1, H), lambda b: (0, 0)),               # bq
            pl.BlockSpec((H, 2 * H), lambda b: (0, 0)),           # wkv (fused K|V, bf16)
            pl.BlockSpec((1, 2 * H), lambda b: (0, 0)),           # bkv
            pl.BlockSpec((H, H), lambda b: (0, 0)),               # wo (bf16)
            pl.BlockSpec((1, H), lambda b: (0, 0)),               # bo
        ],
        out_specs=pl.BlockSpec((bb, E, H), lambda b: (b, 0, 0)),
        compiler_params=pltpu.CompilerParams(
            dimension_semantics=("parallel",),
            vmem_limit_bytes=_vmem_budget()),
    )(h_entity, h_token, addmask, wl, bl.reshape(1, H), wq, bq.reshape(1, H),
      wkv, bkv.reshape(1, 2 * H), wo, bo.reshape(1, H))


# ---------------- 2) pointer matmuls + concat-free classifier ---------------- #

def _tail_kernel(h_ref, pleft_ref, pright_ref, tok_ref, wc_ref, bc_ref, o_ref):
    bb, E, H = h_ref.shape
    Cp = wc_ref.shape[1]
    bf16 = jnp.bfloat16

    tok = tok_ref[...].astype(bf16)                                    # (bb, T, H)
    left = jnp.einsum('bet,bth->beh', pleft_ref[...].astype(bf16), tok,
                      preferred_element_type=jnp.float32)              # (bb, E, H)
    right = jnp.einsum('bet,bth->beh', pright_ref[...].astype(bf16), tok,
                       preferred_element_type=jnp.float32)             # (bb, E, H)

    wc = wc_ref[...]                                                   # (3H, Cp) bf16
    hf = jnp.maximum(h_ref[...], 0.0).reshape(bb * E, H).astype(bf16)
    lf = jnp.maximum(left, 0.0).reshape(bb * E, H).astype(bf16)
    rf = jnp.maximum(right, 0.0).reshape(bb * E, H).astype(bf16)

    # classifier = Dropout(eval id) -> ReLU -> Linear(3H, C); the concat is folded away:
    #   relu([h,l,r]) @ Wc = relu(h)@Wc[:H] + relu(l)@Wc[H:2H] + relu(r)@Wc[2H:]
    acc = jnp.dot(hf, wc[:H, :], preferred_element_type=jnp.float32)
    acc = acc + jnp.dot(lf, wc[H:2 * H, :], preferred_element_type=jnp.float32)
    acc = acc + jnp.dot(rf, wc[2 * H:, :], preferred_element_type=jnp.float32)
    out = acc + bc_ref[...]                                            # (bb*E, Cp) f32
    o_ref[...] = out.reshape(bb, E, Cp).astype(o_ref.dtype)            # lane-dense (Cp=128k)


def tail_classifier(h, p_left, p_right, tok, wc, bc):
    B, E, H = h.shape
    T = tok.shape[1]
    C = wc.shape[1]
    Cp = max(128, ((C + 127) // 128) * 128)          # lane-pad the tiny class dim to 128
    wc_p = jnp.pad(wc, ((0, 0), (0, Cp - C)))
    bc_p = jnp.pad(bc, (0, Cp - C)).reshape(1, Cp)
    bb = _batch_block(B)
    out = pl.pallas_call(
        _tail_kernel,
        out_shape=jax.ShapeDtypeStruct((B, E, Cp), h.dtype),
        grid=(B // bb,),
        in_specs=[
            pl.BlockSpec((bb, E, H), lambda b: (b, 0, 0)),        # h
            pl.BlockSpec((bb, E, T), lambda b: (b, 0, 0)),        # p_left
            pl.BlockSpec((bb, E, T), lambda b: (b, 0, 0)),        # p_right
            pl.BlockSpec((bb, T, H), lambda b: (b, 0, 0)),        # h_token
            pl.BlockSpec((3 * H, Cp), lambda b: (0, 0)),          # classifier weight (bf16)
            pl.BlockSpec((1, Cp), lambda b: (0, 0)),              # classifier bias
        ],
        out_specs=pl.BlockSpec((bb, E, Cp), lambda b: (b, 0, 0)),
        compiler_params=pltpu.CompilerParams(
            dimension_semantics=("parallel",),
            vmem_limit_bytes=_vmem_budget()),
    )(h, p_left, p_right, tok, wc_p, bc_p)
    return out[..., :C]


# ------------------------------- Module wrapper ------------------------------- #

def init_params(key, cls_size, hidden, n_types):
    ks = jax.random.split(key, 12)

    def w(k, shape):
        return jax.random.normal(k, shape, jnp.float32) * 0.02

    bf16 = jnp.bfloat16
    wk, bk = w(ks[2], (hidden, hidden)), w(ks[3], (hidden,))
    wv, bv = w(ks[4], (hidden, hidden)), w(ks[5], (hidden,))
    return dict(
        # Matmul weights pre-cast to bf16 at init (MXU-native); biases stay f32.
        w_lin=w(ks[0], (cls_size, hidden)).astype(bf16), b_lin=w(ks[1], (hidden,)),
        wq=w(ks[6], (hidden, hidden)).astype(bf16), bq=w(ks[7], (hidden,)),
        # K/V projections fused once at init (column-wise concat) -> single matmul at runtime.
        wkv=jnp.concatenate([wk, wv], axis=1).astype(bf16),
        bkv=jnp.concatenate([bk, bv]),
        wo=w(ks[8], (hidden, hidden)).astype(bf16), bo=w(ks[9], (hidden,)),
        wc=w(ks[10], (3 * hidden, n_types)).astype(bf16), bc=w(ks[11], (n_types,)),
    )


def entity_type_predictor(params, h_entity, h_token, p_left, p_right, token_mask,
                          *, num_heads):
    """Forward pass of EntityTypePredictor (eval-mode dropout = identity)."""
    H = params["wq"].shape[0]
    assert H % num_heads == 0
    d = H // num_heads
    scale = 1.0 / (d ** 0.5)

    # Additive key-padding mask (PyTorch MHA: key_padding_mask = ~token_mask -> -inf).
    addmask = jnp.where(token_mask, 0.0, -1e9).astype(jnp.float32)[:, None, :]   # [B,1,T]

    # 1) fused: Linear(relu(h_entity)) + MHA(out_proj) + residual
    h = fused_linear_mha(h_entity, h_token, addmask,
                         params["w_lin"], params["b_lin"],
                         params["wq"], params["bq"], params["wkv"], params["bkv"],
                         params["wo"], params["bo"],
                         num_heads=num_heads, scale=scale)

    # 2) pointer matmuls + concat-free, lane-padded classifier
    return tail_classifier(h, p_left, p_right, h_token, params["wc"], params["bc"])


# ------------------------------ Pure-JAX reference ----------------------------- #

def reference(params, h_entity, h_token, p_left, p_right, token_mask, num_heads):
    B, E, _ = h_entity.shape
    T = h_token.shape[1]
    H = params["wq"].shape[0]
    d = H // num_heads
    f32 = jnp.float32

    e = jnp.maximum(h_entity, 0.0) @ params["w_lin"].astype(f32) + params["b_lin"]
    q = e @ params["wq"].astype(f32) + params["bq"]
    wkv = params["wkv"].astype(f32)
    wk, wv = wkv[:, :H], wkv[:, H:]
    bk, bv = params["bkv"][:H], params["bkv"][H:]
    k = h_token @ wk + bk
    v = h_token @ wv + bv

    def heads(x, L):
        return x.reshape(B, L, num_heads, d).transpose(0, 2, 1, 3)

    Q, K, V = heads(q, E), heads(k, T), heads(v, T)
    mask = jnp.where(token_mask, 0.0, -1e9)[:, None, None, :]
    s = jnp.einsum("bhqd,bhkd->bhqk", Q, K) / (d ** 0.5) + mask
    p = jax.nn.softmax(s, axis=-1)
    ctx = jnp.einsum("bhqk,bhkd->bhqd", p, V).transpose(0, 2, 1, 3).reshape(B, E, H)
    h = e + (ctx @ params["wo"].astype(f32) + params["bo"])

    left = p_left @ h_token
    right = p_right @ h_token
    feat = jnp.concatenate([h, left, right], axis=-1)
    return jnp.maximum(feat, 0.0) @ params["wc"].astype(f32) + params["bc"]


# ------------------------------------ Main ------------------------------------ #

if __name__ == "__main__":
    key = jax.random.PRNGKey(0)
    B, E, T = 2, 8, 16                  # batch, entities (queries), tokens (keys)
    CLS, H, NH, NTYPES = 64, 32, 4, 10  # cls_size, hidden, num_heads, entity_type_count
    ks = jax.random.split(key, 5)

    h_entity = jax.random.normal(ks[0], (B, E, CLS), jnp.float32)
    h_token = jax.random.normal(ks[1], (B, T, H), jnp.float32)
    p_left = jax.nn.softmax(jax.random.normal(ks[2], (B, E, T), jnp.float32), axis=-1)
    p_right = jax.nn.softmax(jax.random.normal(ks[3], (B, E, T), jnp.float32), axis=-1)
    # token_mask: True = valid token; last 3 tokens of batch 1 are padding.
    token_mask = jnp.ones((B, T), dtype=bool).at[1, T - 3:].set(False)

    params = init_params(ks[4], CLS, H, NTYPES)

    logits = entity_type_predictor(params, h_entity, h_token, p_left, p_right,
                                   token_mask, num_heads=NH)
    jax.block_until_ready(logits)

    ref = reference(params, h_entity, h_token, p_left, p_right, token_mask, NH)
    assert logits.shape == (B, E, NTYPES)
    max_err = float(jnp.max(jnp.abs(logits - ref)))
    # bf16 MXU inputs + approx reciprocal in the softmax -> loosened tolerance vs f32 reference.
    assert jnp.allclose(logits, ref, atol=5e-3, rtol=5e-3), f"max_abs_err={max_err}"

    print("KERNEL_OK")
</pallas_src>

<mosaic_0001>
module attributes {stable_mosaic.version = 11 : i64} {
  func.func @_mha_kernel(%arg0: i32, %arg1: memref<2x8x64xf32, #tpu.memory_space<vmem>>, %arg2: memref<2x16x32xf32, #tpu.memory_space<vmem>>, %arg3: memref<2x1x16xf32, #tpu.memory_space<vmem>>, %arg4: memref<64x32xbf16, #tpu.memory_space<vmem>>, %arg5: memref<1x32xf32, #tpu.memory_space<vmem>>, %arg6: memref<32x32xbf16, #tpu.memory_space<vmem>>, %arg7: memref<1x32xf32, #tpu.memory_space<vmem>>, %arg8: memref<32x64xbf16, #tpu.memory_space<vmem>>, %arg9: memref<1x64xf32, #tpu.memory_space<vmem>>, %arg10: memref<32x32xbf16, #tpu.memory_space<vmem>>, %arg11: memref<1x32xf32, #tpu.memory_space<vmem>>, %arg12: memref<2x8x32xf32, #tpu.memory_space<vmem>>) attributes {dimension_semantics = [#tpu.dimension_semantics<parallel>], iteration_bounds = array<i64: 1>, scalar_prefetch = 0 : i64, scratch_operands = 0 : i64, tpu.core_type = #tpu.core_type<tc>, window_params = [{transform_indices = @transform_0, window_bounds = array<i64: 2, 8, 64>}, {transform_indices = @transform_1, window_bounds = array<i64: 2, 16, 32>}, {transform_indices = @transform_2, window_bounds = array<i64: 2, 1, 16>}, {pipeline_mode = #tpu.pipeline_mode<synchronous>, transform_indices = @transform_3, window_bounds = array<i64: 64, 32>}, {pipeline_mode = #tpu.pipeline_mode<synchronous>, transform_indices = @transform_4, window_bounds = array<i64: 1, 32>}, {pipeline_mode = #tpu.pipeline_mode<synchronous>, transform_indices = @transform_5, window_bounds = array<i64: 32, 32>}, {pipeline_mode = #tpu.pipeline_mode<synchronous>, transform_indices = @transform_6, window_bounds = array<i64: 1, 32>}, {pipeline_mode = #tpu.pipeline_mode<synchronous>, transform_indices = @transform_7, window_bounds = array<i64: 32, 64>}, {pipeline_mode = #tpu.pipeline_mode<synchronous>, transform_indices = @transform_8, window_bounds = array<i64: 1, 64>}, {pipeline_mode = #tpu.pipeline_mode<synchronous>, transform_indices = @transform_9, window_bounds = array<i64: 32, 32>}, {pipeline_mode = #tpu.pipeline_mode<synchronous>, transform_indices = @transform_10, window_bounds = array<i64: 1, 32>}, {transform_indices = @transform_11, window_bounds = array<i64: 2, 8, 32>}]} {
    %c0 = arith.constant 0 : index
    %c0_0 = arith.constant 0 : index
    %c0_1 = arith.constant 0 : index
    %0 = vector.load %arg1[%c0, %c0_0, %c0_1] : memref<2x8x64xf32, #tpu.memory_space<vmem>>, vector<2x8x64xf32>
    %cst = arith.constant 0.000000e+00 : f32
    %1 = vector.broadcast %cst : f32 to vector<2x8x64xf32>
    %2 = arith.maximumf %0, %1 : vector<2x8x64xf32>
    %3 = vector.shape_cast %2 : vector<2x8x64xf32> to vector<16x64xf32>
    %4 = arith.truncf %3 : vector<16x64xf32> to vector<16x64xbf16>
    %c0_2 = arith.constant 0 : index
    %c0_3 = arith.constant 0 : index
    %c0_4 = arith.constant 0 : index
    %5 = vector.load %arg2[%c0_2, %c0_3, %c0_4] : memref<2x16x32xf32, #tpu.memory_space<vmem>>, vector<2x16x32xf32>
    %6 = vector.shape_cast %5 : vector<2x16x32xf32> to vector<32x32xf32>
    %7 = arith.truncf %6 : vector<32x32xf32> to vector<32x32xbf16>
    %c0_5 = arith.constant 0 : index
    %c0_6 = arith.constant 0 : index
    %8 = vector.load %arg4[%c0_5, %c0_6] : memref<64x32xbf16, #tpu.memory_space<vmem>>, vector<64x32xbf16>
    %cst_7 = arith.constant dense<0.000000e+00> : vector<16x32xf32>
    %9 = tpu.matmul %4, %8, %cst_7 {dimension_numbers = #tpu.dot_dimension_numbers<[1], [0], [0], [1], [0, 0, 1, 1], [], []>} : vector<16x64xbf16>, vector<64x32xbf16>, vector<16x32xf32> -> vector<16x32xf32>
    %c0_8 = arith.constant 0 : index
    %c0_9 = arith.constant 0 : index
    %10 = vector.load %arg5[%c0_8, %c0_9] : memref<1x32xf32, #tpu.memory_space<vmem>>, vector<1x32xf32>
    %11 = vector.broadcast %10 : vector<1x32xf32> to vector<16x32xf32>
    %12 = arith.addf %9, %11 : vector<16x32xf32>
    %13 = arith.truncf %12 : vector<16x32xf32> to vector<16x32xbf16>
    %c0_10 = arith.constant 0 : index
    %c0_11 = arith.constant 0 : index
    %14 = vector.load %arg6[%c0_10, %c0_11] : memref<32x32xbf16, #tpu.memory_space<vmem>>, vector<32x32xbf16>
    %cst_12 = arith.constant dense<0.000000e+00> : vector<16x32xf32>
    %15 = tpu.matmul %13, %14, %cst_12 {dimension_numbers = #tpu.dot_dimension_numbers<[1], [0], [0], [1], [0, 0, 1, 1], [], []>} : vector<16x32xbf16>, vector<32x32xbf16>, vector<16x32xf32> -> vector<16x32xf32>
    %c0_13 = arith.constant 0 : index
    %c0_14 = arith.constant 0 : index
    %16 = vector.load %arg7[%c0_13, %c0_14] : memref<1x32xf32, #tpu.memory_space<vmem>>, vector<1x32xf32>
    %17 = vector.broadcast %16 : vector<1x32xf32> to vector<16x32xf32>
    %18 = arith.addf %15, %17 : vector<16x32xf32>
    %cst_15 = arith.constant 0.353553385 : f32
    %19 = vector.broadcast %cst_15 : f32 to vector<16x32xf32>
    %20 = arith.mulf %18, %19 : vector<16x32xf32>
    %21 = arith.truncf %20 : vector<16x32xf32> to vector<16x32xbf16>
    %c0_16 = arith.constant 0 : index
    %c0_17 = arith.constant 0 : index
    %22 = vector.load %arg8[%c0_16, %c0_17] : memref<32x64xbf16, #tpu.memory_space<vmem>>, vector<32x64xbf16>
    %cst_18 = arith.constant dense<0.000000e+00> : vector<32x64xf32>
    %23 = tpu.matmul %7, %22, %cst_18 {dimension_numbers = #tpu.dot_dimension_numbers<[1], [0], [0], [1], [0, 0, 1, 1], [], []>} : vector<32x32xbf16>, vector<32x64xbf16>, vector<32x64xf32> -> vector<32x64xf32>
    %c0_19 = arith.constant 0 : index
    %c0_20 = arith.constant 0 : index
    %24 = vector.load %arg9[%c0_19, %c0_20] : memref<1x64xf32, #tpu.memory_space<vmem>>, vector<1x64xf32>
    %25 = vector.broadcast %24 : vector<1x64xf32> to vector<32x64xf32>
    %26 = arith.addf %23, %25 : vector<32x64xf32>
    %27 = vector.extract_strided_slice %26 {offsets = [0, 0], sizes = [32, 32], strides = [1, 1]} : vector<32x64xf32> to vector<32x32xf32>
    %28 = arith.truncf %27 : vector<32x32xf32> to vector<32x32xbf16>
    %29 = vector.extract_strided_slice %26 {offsets = [0, 32], sizes = [32, 32], strides = [1, 1]} : vector<32x64xf32> to vector<32x32xf32>
    %30 = arith.truncf %29 : vector<32x32xf32> to vector<32x32xbf16>
    %c0_21 = arith.constant 0 : index
    %c0_22 = arith.constant 0 : index
    %31 = vector.load %arg10[%c0_21, %c0_22] : memref<32x32xbf16, #tpu.memory_space<vmem>>, vector<32x32xbf16>
    %c0_23 = arith.constant 0 : index
    %c0_24 = arith.constant 0 : index
    %32 = vector.load %arg11[%c0_23, %c0_24] : memref<1x32xf32, #tpu.memory_space<vmem>>, vector<1x32xf32>
    %33 = vector.extract_strided_slice %12 {offsets = [0, 0], sizes = [8, 32], strides = [1, 1]} : vector<16x32xf32> to vector<8x32xf32>
    %34 = vector.extract_strided_slice %21 {offsets = [0, 0], sizes = [8, 32], strides = [1, 1]} : vector<16x32xbf16> to vector<8x32xbf16>
    %35 = vector.extract_strided_slice %28 {offsets = [0, 0], sizes = [16, 32], strides = [1, 1]} : vector<32x32xbf16> to vector<16x32xbf16>
    %36 = vector.extract_strided_slice %30 {offsets = [0, 0], sizes = [16, 32], strides = [1, 1]} : vector<32x32xbf16> to vector<16x32xbf16>
    %c0_25 = arith.constant 0 : index
    %c0_26 = arith.constant 0 : index
    %c0_27 = arith.constant 0 : index
    %37 = vector.load %arg3[%c0_25, %c0_26, %c0_27] : memref<2x1x16xf32, #tpu.memory_space<vmem>>, vector<1x1x16xf32>
    %38 = vector.shape_cast %37 : vector<1x1x16xf32> to vector<1x16xf32>
    %39 = vector.shape_cast %38 : vector<1x16xf32> to vector<1x16xf32>
    %40 = vector.broadcast %39 : vector<1x16xf32> to vector<8x16xf32>
    %cst_28 = arith.constant 0.000000e+00 : f32
    %41 = vector.broadcast %cst_28 : f32 to vector<8x32xf32>
    %42 = vector.extract_strided_slice %34 {offsets = [0, 0], sizes = [8, 8], strides = [1, 1]} : vector<8x32xbf16> to vector<8x8xbf16>
    %43 = vector.extract_strided_slice %35 {offsets = [0, 0], sizes = [16, 8], strides = [1, 1]} : vector<16x32xbf16> to vector<16x8xbf16>
    %cst_29 = arith.constant dense<0.000000e+00> : vector<8x16xf32>
    %44 = tpu.matmul %42, %43, %cst_29 {dimension_numbers = #tpu.dot_dimension_numbers<[1], [1], [0], [0], [0, 0, 1, 0], [], []>} : vector<8x8xbf16>, vector<16x8xbf16>, vector<8x16xf32> -> vector<8x16xf32>
    %45 = arith.addf %44, %40 : vector<8x16xf32>
    %cst_30 = arith.constant dense<0xFF800000> : vector<8xf32>
    %46 = vector.multi_reduction <maximumf>, %45, %cst_30 [1] : vector<8x16xf32> to vector<8xf32>
    %47 = vector.shape_cast %46 : vector<8xf32> to vector<8x1xf32>
    %48 = vector.broadcast %47 : vector<8x1xf32> to vector<8x16xf32>
    %49 = arith.subf %45, %48 : vector<8x16xf32>
    %50 = math.exp %49 : vector<8x16xf32>
    %cst_31 = arith.constant dense<0.000000e+00> : vector<8xf32>
    %51 = vector.multi_reduction <add>, %50, %cst_31 [1] : vector<8x16xf32> to vector<8xf32>
    %52 = vector.shape_cast %51 : vector<8xf32> to vector<8x1xf32>
    %53 = tpu.reciprocal %52 {approx = true} : vector<8x1xf32> -> vector<8x1xf32>
    %54 = vector.broadcast %53 : vector<8x1xf32> to vector<8x16xf32>
    %55 = arith.mulf %50, %54 : vector<8x16xf32>
    %56 = arith.truncf %55 : vector<8x16xf32> to vector<8x16xbf16>
    %57 = vector.extract_strided_slice %36 {offsets = [0, 0], sizes = [16, 8], strides = [1, 1]} : vector<16x32xbf16> to vector<16x8xbf16>
    %cst_32 = arith.constant dense<0.000000e+00> : vector<8x8xf32>
    %58 = tpu.matmul %56, %57, %cst_32 {dimension_numbers = #tpu.dot_dimension_numbers<[1], [0], [0], [1], [0, 0, 1, 1], [], []>} : vector<8x16xbf16>, vector<16x8xbf16>, vector<8x8xf32> -> vector<8x8xf32>
    %59 = arith.truncf %58 : vector<8x8xf32> to vector<8x8xbf16>
    %60 = vector.extract_strided_slice %31 {offsets = [0, 0], sizes = [8, 32], strides = [1, 1]} : vector<32x32xbf16> to vector<8x32xbf16>
    %cst_33 = arith.constant dense<0.000000e+00> : vector<8x32xf32>
    %61 = tpu.matmul %59, %60, %cst_33 {dimension_numbers = #tpu.dot_dimension_numbers<[1], [0], [0], [1], [0, 0, 1, 1], [], []>} : vector<8x8xbf16>, vector<8x32xbf16>, vector<8x32xf32> -> vector<8x32xf32>
    %62 = arith.addf %41, %61 : vector<8x32xf32>
    %63 = vector.extract_strided_slice %34 {offsets = [0, 8], sizes = [8, 8], strides = [1, 1]} : vector<8x32xbf16> to vector<8x8xbf16>
    %64 = vector.extract_strided_slice %35 {offsets = [0, 8], sizes = [16, 8], strides = [1, 1]} : vector<16x32xbf16> to vector<16x8xbf16>
    %cst_34 = arith.constant dense<0.000000e+00> : vector<8x16xf32>
    %65 = tpu.matmul %63, %64, %cst_34 {dimension_numbers = #tpu.dot_dimension_numbers<[1], [1], [0], [0], [0, 0, 1, 0], [], []>} : vector<8x8xbf16>, vector<16x8xbf16>, vector<8x16xf32> -> vector<8x16xf32>
    %66 = arith.addf %65, %40 : vector<8x16xf32>
    %cst_35 = arith.constant dense<0xFF800000> : vector<8xf32>
    %67 = vector.multi_reduction <maximumf>, %66, %cst_35 [1] : vector<8x16xf32> to vector<8xf32>
    %68 = vector.shape_cast %67 : vector<8xf32> to vector<8x1xf32>
    %69 = vector.broadcast %68 : vector<8x1xf32> to vector<8x16xf32>
    %70 = arith.subf %66, %69 : vector<8x16xf32>
    %71 = math.exp %70 : vector<8x16xf32>
    %cst_36 = arith.constant dense<0.000000e+00> : vector<8xf32>
    %72 = vector.multi_reduction <add>, %71, %cst_36 [1] : vector<8x16xf32> to vector<8xf32>
    %73 = vector.shape_cast %72 : vector<8xf32> to vector<8x1xf32>
    %74 = tpu.reciprocal %73 {approx = true} : vector<8x1xf32> -> vector<8x1xf32>
    %75 = vector.broadcast %74 : vector<8x1xf32> to vector<8x16xf32>
    %76 = arith.mulf %71, %75 : vector<8x16xf32>
    %77 = arith.truncf %76 : vector<8x16xf32> to vector<8x16xbf16>
    %78 = vector.extract_strided_slice %36 {offsets = [0, 8], sizes = [16, 8], strides = [1, 1]} : vector<16x32xbf16> to vector<16x8xbf16>
    %cst_37 = arith.constant dense<0.000000e+00> : vector<8x8xf32>
    %79 = tpu.matmul %77, %78, %cst_37 {dimension_numbers = #tpu.dot_dimension_numbers<[1], [0], [0], [1], [0, 0, 1, 1], [], []>} : vector<8x16xbf16>, vector<16x8xbf16>, vector<8x8xf32> -> vector<8x8xf32>
    %80 = arith.truncf %79 : vector<8x8xf32> to vector<8x8xbf16>
    %81 = vector.extract_strided_slice %31 {offsets = [8, 0], sizes = [8, 32], strides = [1, 1]} : vector<32x32xbf16> to vector<8x32xbf16>
    %cst_38 = arith.constant dense<0.000000e+00> : vector<8x32xf32>
    %82 = tpu.matmul %80, %81, %cst_38 {dimension_numbers = #tpu.dot_dimension_numbers<[1], [0], [0], [1], [0, 0, 1, 1], [], []>} : vector<8x8xbf16>, vector<8x32xbf16>, vector<8x32xf32> -> vector<8x32xf32>
    %83 = arith.addf %62, %82 : vector<8x32xf32>
    %84 = vector.extract_strided_slice %34 {offsets = [0, 16], sizes = [8, 8], strides = [1, 1]} : vector<8x32xbf16> to vector<8x8xbf16>
    %85 = vector.extract_strided_slice %35 {offsets = [0, 16], sizes = [16, 8], strides = [1, 1]} : vector<16x32xbf16> to vector<16x8xbf16>
    %cst_39 = arith.constant dense<0.000000e+00> : vector<8x16xf32>
    %86 = tpu.matmul %84, %85, %cst_39 {dimension_numbers = #tpu.dot_dimension_numbers<[1], [1], [0], [0], [0, 0, 1, 0], [], []>} : vector<8x8xbf16>, vector<16x8xbf16>, vector<8x16xf32> -> vector<8x16xf32>
    %87 = arith.addf %86, %40 : vector<8x16xf32>
    %cst_40 = arith.constant dense<0xFF800000> : vector<8xf32>
    %88 = vector.multi_reduction <maximumf>, %87, %cst_40 [1] : vector<8x16xf32> to vector<8xf32>
    %89 = vector.shape_cast %88 : vector<8xf32> to vector<8x1xf32>
    %90 = vector.broadcast %89 : vector<8x1xf32> to vector<8x16xf32>
    %91 = arith.subf %87, %90 : vector<8x16xf32>
    %92 = math.exp %91 : vector<8x16xf32>
    %cst_41 = arith.constant dense<0.000000e+00> : vector<8xf32>
    %93 = vector.multi_reduction <add>, %92, %cst_41 [1] : vector<8x16xf32> to vector<8xf32>
    %94 = vector.shape_cast %93 : vector<8xf32> to vector<8x1xf32>
    %95 = tpu.reciprocal %94 {approx = true} : vector<8x1xf32> -> vector<8x1xf32>
    %96 = vector.broadcast %95 : vector<8x1xf32> to vector<8x16xf32>
    %97 = arith.mulf %92, %96 : vector<8x16xf32>
    %98 = arith.truncf %97 : vector<8x16xf32> to vector<8x16xbf16>
    %99 = vector.extract_strided_slice %36 {offsets = [0, 16], sizes = [16, 8], strides = [1, 1]} : vector<16x32xbf16> to vector<16x8xbf16>
    %cst_42 = arith.constant dense<0.000000e+00> : vector<8x8xf32>
    %100 = tpu.matmul %98, %99, %cst_42 {dimension_numbers = #tpu.dot_dimension_numbers<[1], [0], [0], [1], [0, 0, 1, 1], [], []>} : vector<8x16xbf16>, vector<16x8xbf16>, vector<8x8xf32> -> vector<8x8xf32>
    %101 = arith.truncf %100 : vector<8x8xf32> to vector<8x8xbf16>
    %102 = vector.extract_strided_slice %31 {offsets = [16, 0], sizes = [8, 32], strides = [1, 1]} : vector<32x32xbf16> to vector<8x32xbf16>
    %cst_43 = arith.constant dense<0.000000e+00> : vector<8x32xf32>
    %103 = tpu.matmul %101, %102, %cst_43 {dimension_numbers = #tpu.dot_dimension_numbers<[1], [0], [0], [1], [0, 0, 1, 1], [], []>} : vector<8x8xbf16>, vector<8x32xbf16>, vector<8x32xf32> -> vector<8x32xf32>
    %104 = arith.addf %83, %103 : vector<8x32xf32>
    %105 = vector.extract_strided_slice %34 {offsets = [0, 24], sizes = [8, 8], strides = [1, 1]} : vector<8x32xbf16> to vector<8x8xbf16>
    %106 = vector.extract_strided_slice %35 {offsets = [0, 24], sizes = [16, 8], strides = [1, 1]} : vector<16x32xbf16> to vector<16x8xbf16>
    %cst_44 = arith.constant dense<0.000000e+00> : vector<8x16xf32>
    %107 = tpu.matmul %105, %106, %cst_44 {dimension_numbers = #tpu.dot_dimension_numbers<[1], [1], [0], [0], [0, 0, 1, 0], [], []>} : vector<8x8xbf16>, vector<16x8xbf16>, vector<8x16xf32> -> vector<8x16xf32>
    %108 = arith.addf %107, %40 : vector<8x16xf32>
    %cst_45 = arith.constant dense<0xFF800000> : vector<8xf32>
    %109 = vector.multi_reduction <maximumf>, %108, %cst_45 [1] : vector<8x16xf32> to vector<8xf32>
    %110 = vector.shape_cast %109 : vector<8xf32> to vector<8x1xf32>
    %111 = vector.broadcast %110 : vector<8x1xf32> to vector<8x16xf32>
    %112 = arith.subf %108, %111 : vector<8x16xf32>
    %113 = math.exp %112 : vector<8x16xf32>
    %cst_46 = arith.constant dense<0.000000e+00> : vector<8xf32>
    %114 = vector.multi_reduction <add>, %113, %cst_46 [1] : vector<8x16xf32> to vector<8xf32>
    %115 = vector.shape_cast %114 : vector<8xf32> to vector<8x1xf32>
    %116 = tpu.reciprocal %115 {approx = true} : vector<8x1xf32> -> vector<8x1xf32>
    %117 = vector.broadcast %116 : vector<8x1xf32> to vector<8x16xf32>
    %118 = arith.mulf %113, %117 : vector<8x16xf32>
    %119 = arith.truncf %118 : vector<8x16xf32> to vector<8x16xbf16>
    %120 = vector.extract_strided_slice %36 {offsets = [0, 24], sizes = [16, 8], strides = [1, 1]} : vector<16x32xbf16> to vector<16x8xbf16>
    %cst_47 = arith.constant dense<0.000000e+00> : vector<8x8xf32>
    %121 = tpu.matmul %119, %120, %cst_47 {dimension_numbers = #tpu.dot_dimension_numbers<[1], [0], [0], [1], [0, 0, 1, 1], [], []>} : vector<8x16xbf16>, vector<16x8xbf16>, vector<8x8xf32> -> vector<8x8xf32>
    %122 = arith.truncf %121 : vector<8x8xf32> to vector<8x8xbf16>
    %123 = vector.extract_strided_slice %31 {offsets = [24, 0], sizes = [8, 32], strides = [1, 1]} : vector<32x32xbf16> to vector<8x32xbf16>
    %cst_48 = arith.constant dense<0.000000e+00> : vector<8x32xf32>
    %124 = tpu.matmul %122, %123, %cst_48 {dimension_numbers = #tpu.dot_dimension_numbers<[1], [0], [0], [1], [0, 0, 1, 1], [], []>} : vector<8x8xbf16>, vector<8x32xbf16>, vector<8x32xf32> -> vector<8x32xf32>
    %125 = arith.addf %104, %124 : vector<8x32xf32>
    %126 = arith.addf %33, %125 : vector<8x32xf32>
    %127 = vector.broadcast %32 : vector<1x32xf32> to vector<8x32xf32>
    %128 = arith.addf %126, %127 : vector<8x32xf32>
    %c0_49 = arith.constant 0 : index
    %c0_50 = arith.constant 0 : index
    %c0_51 = arith.constant 0 : index
    %129 = vector.load %arg12[%c0_49, %c0_50, %c0_51] : memref<2x8x32xf32, #tpu.memory_space<vmem>>, vector<1x8x32xf32>
    %130 = vector.shape_cast %129 : vector<1x8x32xf32> to vector<8x32xf32>
    %131 = vector.shape_cast %128 : vector<8x32xf32> to vector<1x8x32xf32>
    tpu.vector_store %arg12[%c0_49, %c0_50, %c0_51], %131 {strides = array<i32>} : memref<2x8x32xf32, #tpu.memory_space<vmem>>, vector<1x8x32xf32>,
    %132 = vector.extract_strided_slice %12 {offsets = [8, 0], sizes = [8, 32], strides = [1, 1]} : vector<16x32xf32> to vector<8x32xf32>
    %133 = vector.extract_strided_slice %21 {offsets = [8, 0], sizes = [8, 32], strides = [1, 1]} : vector<16x32xbf16> to vector<8x32xbf16>
    %134 = vector.extract_strided_slice %28 {offsets = [16, 0], sizes = [16, 32], strides = [1, 1]} : vector<32x32xbf16> to vector<16x32xbf16>
    %135 = vector.extract_strided_slice %30 {offsets = [16, 0], sizes = [16, 32], strides = [1, 1]} : vector<32x32xbf16> to vector<16x32xbf16>
    %c1 = arith.constant 1 : index
    %c0_52 = arith.constant 0 : index
    %c0_53 = arith.constant 0 : index
    %136 = vector.load %arg3[%c1, %c0_52, %c0_53] : memref<2x1x16xf32, #tpu.memory_space<vmem>>, vector<1x1x16xf32>
    %137 = vector.shape_cast %136 : vector<1x1x16xf32> to vector<1x16xf32>
    %138 = vector.shape_cast %137 : vector<1x16xf32> to vector<1x16xf32>
    %139 = vector.broadcast %138 : vector<1x16xf32> to vector<8x16xf32>
    %cst_54 = arith.constant 0.000000e+00 : f32
    %140 = vector.broadcast %cst_54 : f32 to vector<8x32xf32>
    %141 = vector.extract_strided_slice %133 {offsets = [0, 0], sizes = [8, 8], strides = [1, 1]} : vector<8x32xbf16> to vector<8x8xbf16>
    %142 = vector.extract_strided_slice %134 {offsets = [0, 0], sizes = [16, 8], strides = [1, 1]} : vector<16x32xbf16> to vector<16x8xbf16>
    %cst_55 = arith.constant dense<0.000000e+00> : vector<8x16xf32>
    %143 = tpu.matmul %141, %142, %cst_55 {dimension_numbers = #tpu.dot_dimension_numbers<[1], [1], [0], [0], [0, 0, 1, 0], [], []>} : vector<8x8xbf16>, vector<16x8xbf16>, vector<8x16xf32> -> vector<8x16xf32>
    %144 = arith.addf %143, %139 : vector<8x16xf32>
    %cst_56 = arith.constant dense<0xFF800000> : vector<8xf32>
    %145 = vector.multi_reduction <maximumf>, %144, %cst_56 [1] : vector<8x16xf32> to vector<8xf32>
    %146 = vector.shape_cast %145 : vector<8xf32> to vector<8x1xf32>
    %147 = vector.broadcast %146 : vector<8x1xf32> to vector<8x16xf32>
    %148 = arith.subf %144, %147 : vector<8x16xf32>
    %149 = math.exp %148 : vector<8x16xf32>
    %cst_57 = arith.constant dense<0.000000e+00> : vector<8xf32>
    %150 = vector.multi_reduction <add>, %149, %cst_57 [1] : vector<8x16xf32> to vector<8xf32>
    %151 = vector.shape_cast %150 : vector<8xf32> to vector<8x1xf32>
    %152 = tpu.reciprocal %151 {approx = true} : vector<8x1xf32> -> vector<8x1xf32>
    %153 = vector.broadcast %152 : vector<8x1xf32> to vector<8x16xf32>
    %154 = arith.mulf %149, %153 : vector<8x16xf32>
    %155 = arith.truncf %154 : vector<8x16xf32> to vector<8x16xbf16>
    %156 = vector.extract_strided_slice %135 {offsets = [0, 0], sizes = [16, 8], strides = [1, 1]} : vector<16x32xbf16> to vector<16x8xbf16>
    %cst_58 = arith.constant dense<0.000000e+00> : vector<8x8xf32>
    %157 = tpu.matmul %155, %156, %cst_58 {dimension_numbers = #tpu.dot_dimension_numbers<[1], [0], [0], [1], [0, 0, 1, 1], [], []>} : vector<8x16xbf16>, vector<16x8xbf16>, vector<8x8xf32> -> vector<8x8xf32>
    %158 = arith.truncf %157 : vector<8x8xf32> to vector<8x8xbf16>
    %159 = vector.extract_strided_slice %31 {offsets = [0, 0], sizes = [8, 32], strides = [1, 1]} : vector<32x32xbf16> to vector<8x32xbf16>
    %cst_59 = arith.constant dense<0.000000e+00> : vector<8x32xf32>
    %160 = tpu.matmul %158, %159, %cst_59 {dimension_numbers = #tpu.dot_dimension_numbers<[1], [0], [0], [1], [0, 0, 1, 1], [], []>} : vector<8x8xbf16>, vector<8x32xbf16>, vector<8x32xf32> -> vector<8x32xf32>
    %161 = arith.addf %140, %160 : vector<8x32xf32>
    %162 = vector.extract_strided_slice %133 {offsets = [0, 8], sizes = [8, 8], strides = [1, 1]} : vector<8x32xbf16> to vector<8x8xbf16>
    %163 = vector.extract_strided_slice %134 {offsets = [0, 8], sizes = [16, 8], strides = [1, 1]} : vector<16x32xbf16> to vector<16x8xbf16>
    %cst_60 = arith.constant dense<0.000000e+00> : vector<8x16xf32>
    %164 = tpu.matmul %162, %163, %cst_60 {dimension_numbers = #tpu.dot_dimension_numbers<[1], [1], [0], [0], [0, 0, 1, 0], [], []>} : vector<8x8xbf16>, vector<16x8xbf16>, vector<8x16xf32> -> vector<8x16xf32>
    %165 = arith.addf %164, %139 : vector<8x16xf32>
    %cst_61 = arith.constant dense<0xFF800000> : vector<8xf32>
    %166 = vector.multi_reduction <maximumf>, %165, %cst_61 [1] : vector<8x16xf32> to vector<8xf32>
    %167 = vector.shape_cast %166 : vector<8xf32> to vector<8x1xf32>
    %168 = vector.broadcast %167 : vector<8x1xf32> to vector<8x16xf32>
    %169 = arith.subf %165, %168 : vector<8x16xf32>
    %170 = math.exp %169 : vector<8x16xf32>
    %cst_62 = arith.constant dense<0.000000e+00> : vector<8xf32>
    %171 = vector.multi_reduction <add>, %170, %cst_62 [1] : vector<8x16xf32> to vector<8xf32>
    %172 = vector.shape_cast %171 : vector<8xf32> to vector<8x1xf32>
    %173 = tpu.reciprocal %172 {approx = true} : vector<8x1xf32> -> vector<8x1xf32>
    %174 = vector.broadcast %173 : vector<8x1xf32> to vector<8x16xf32>
    %175 = arith.mulf %170, %174 : vector<8x16xf32>
    %176 = arith.truncf %175 : vector<8x16xf32> to vector<8x16xbf16>
    %177 = vector.extract_strided_slice %135 {offsets = [0, 8], sizes = [16, 8], strides = [1, 1]} : vector<16x32xbf16> to vector<16x8xbf16>
    %cst_63 = arith.constant dense<0.000000e+00> : vector<8x8xf32>
    %178 = tpu.matmul %176, %177, %cst_63 {dimension_numbers = #tpu.dot_dimension_numbers<[1], [0], [0], [1], [0, 0, 1, 1], [], []>} : vector<8x16xbf16>, vector<16x8xbf16>, vector<8x8xf32> -> vector<8x8xf32>
    %179 = arith.truncf %178 : vector<8x8xf32> to vector<8x8xbf16>
    %180 = vector.extract_strided_slice %31 {offsets = [8, 0], sizes = [8, 32], strides = [1, 1]} : vector<32x32xbf16> to vector<8x32xbf16>
    %cst_64 = arith.constant dense<0.000000e+00> : vector<8x32xf32>
    %181 = tpu.matmul %179, %180, %cst_64 {dimension_numbers = #tpu.dot_dimension_numbers<[1], [0], [0], [1], [0, 0, 1, 1], [], []>} : vector<8x8xbf16>, vector<8x32xbf16>, vector<8x32xf32> -> vector<8x32xf32>
    %182 = arith.addf %161, %181 : vector<8x32xf32>
    %183 = vector.extract_strided_slice %133 {offsets = [0, 16], sizes = [8, 8], strides = [1, 1]} : vector<8x32xbf16> to vector<8x8xbf16>
    %184 = vector.extract_strided_slice %134 {offsets = [0, 16], sizes = [16, 8], strides = [1, 1]} : vector<16x32xbf16> to vector<16x8xbf16>
    %cst_65 = arith.constant dense<0.000000e+00> : vector<8x16xf32>
    %185 = tpu.matmul %183, %184, %cst_65 {dimension_numbers = #tpu.dot_dimension_numbers<[1], [1], [0], [0], [0, 0, 1, 0], [], []>} : vector<8x8xbf16>, vector<16x8xbf16>, vector<8x16xf32> -> vector<8x16xf32>
    %186 = arith.addf %185, %139 : vector<8x16xf32>
    %cst_66 = arith.constant dense<0xFF800000> : vector<8xf32>
    %187 = vector.multi_reduction <maximumf>, %186, %cst_66 [1] : vector<8x16xf32> to vector<8xf32>
    %188 = vector.shape_cast %187 : vector<8xf32> to vector<8x1xf32>
    %189 = vector.broadcast %188 : vector<8x1xf32> to vector<8x16xf32>
    %190 = arith.subf %186, %189 : vector<8x16xf32>
    %191 = math.exp %190 : vector<8x16xf32>
    %cst_67 = arith.constant dense<0.000000e+00> : vector<8xf32>
    %192 = vector.multi_reduction <add>, %191, %cst_67 [1] : vector<8x16xf32> to vector<8xf32>
    %193 = vector.shape_cast %192 : vector<8xf32> to vector<8x1xf32>
    %194 = tpu.reciprocal %193 {approx = true} : vector<8x1xf32> -> vector<8x1xf32>
    %195 = vector.broadcast %194 : vector<8x1xf32> to vector<8x16xf32>
    %196 = arith.mulf %191, %195 : vector<8x16xf32>
    %197 = arith.truncf %196 : vector<8x16xf32> to vector<8x16xbf16>
    %198 = vector.extract_strided_slice %135 {offsets = [0, 16], sizes = [16, 8], strides = [1, 1]} : vector<16x32xbf16> to vector<16x8xbf16>
    %cst_68 = arith.constant dense<0.000000e+00> : vector<8x8xf32>
    %199 = tpu.matmul %197, %198, %cst_68 {dimension_numbers = #tpu.dot_dimension_numbers<[1], [0], [0], [1], [0, 0, 1, 1], [], []>} : vector<8x16xbf16>, vector<16x8xbf16>, vector<8x8xf32> -> vector<8x8xf32>
    %200 = arith.truncf %199 : vector<8x8xf32> to vector<8x8xbf16>
    %201 = vector.extract_strided_slice %31 {offsets = [16, 0], sizes = [8, 32], strides = [1, 1]} : vector<32x32xbf16> to vector<8x32xbf16>
    %cst_69 = arith.constant dense<0.000000e+00> : vector<8x32xf32>
    %202 = tpu.matmul %200, %201, %cst_69 {dimension_numbers = #tpu.dot_dimension_numbers<[1], [0], [0], [1], [0, 0, 1, 1], [], []>} : vector<8x8xbf16>, vector<8x32xbf16>, vector<8x32xf32> -> vector<8x32xf32>
    %203 = arith.addf %182, %202 : vector<8x32xf32>
    %204 = vector.extract_strided_slice %133 {offsets = [0, 24], sizes = [8, 8], strides = [1, 1]} : vector<8x32xbf16> to vector<8x8xbf16>
    %205 = vector.extract_strided_slice %134 {offsets = [0, 24], sizes = [16, 8], strides = [1, 1]} : vector<16x32xbf16> to vector<16x8xbf16>
    %cst_70 = arith.constant dense<0.000000e+00> : vector<8x16xf32>
    %206 = tpu.matmul %204, %205, %cst_70 {dimension_numbers = #tpu.dot_dimension_numbers<[1], [1], [0], [0], [0, 0, 1, 0], [], []>} : vector<8x8xbf16>, vector<16x8xbf16>, vector<8x16xf32> -> vector<8x16xf32>
    %207 = arith.addf %206, %139 : vector<8x16xf32>
    %cst_71 = arith.constant dense<0xFF800000> : vector<8xf32>
    %208 = vector.multi_reduction <maximumf>, %207, %cst_71 [1] : vector<8x16xf32> to vector<8xf32>
    %209 = vector.shape_cast %208 : vector<8xf32> to vector<8x1xf32>
    %210 = vector.broadcast %209 : vector<8x1xf32> to vector<8x16xf32>
    %211 = arith.subf %207, %210 : vector<8x16xf32>
    %212 = math.exp %211 : vector<8x16xf32>
    %cst_72 = arith.constant dense<0.000000e+00> : vector<8xf32>
    %213 = vector.multi_reduction <add>, %212, %cst_72 [1] : vector<8x16xf32> to vector<8xf32>
    %214 = vector.shape_cast %213 : vector<8xf32> to vector<8x1xf32>
    %215 = tpu.reciprocal %214 {approx = true} : vector<8x1xf32> -> vector<8x1xf32>
    %216 = vector.broadcast %215 : vector<8x1xf32> to vector<8x16xf32>
    %217 = arith.mulf %212, %216 : vector<8x16xf32>
    %218 = arith.truncf %217 : vector<8x16xf32> to vector<8x16xbf16>
    %219 = vector.extract_strided_slice %135 {offsets = [0, 24], sizes = [16, 8], strides = [1, 1]} : vector<16x32xbf16> to vector<16x8xbf16>
    %cst_73 = arith.constant dense<0.000000e+00> : vector<8x8xf32>
    %220 = tpu.matmul %218, %219, %cst_73 {dimension_numbers = #tpu.dot_dimension_numbers<[1], [0], [0], [1], [0, 0, 1, 1], [], []>} : vector<8x16xbf16>, vector<16x8xbf16>, vector<8x8xf32> -> vector<8x8xf32>
    %221 = arith.truncf %220 : vector<8x8xf32> to vector<8x8xbf16>
    %222 = vector.extract_strided_slice %31 {offsets = [24, 0], sizes = [8, 32], strides = [1, 1]} : vector<32x32xbf16> to vector<8x32xbf16>
    %cst_74 = arith.constant dense<0.000000e+00> : vector<8x32xf32>
    %223 = tpu.matmul %221, %222, %cst_74 {dimension_numbers = #tpu.dot_dimension_numbers<[1], [0], [0], [1], [0, 0, 1, 1], [], []>} : vector<8x8xbf16>, vector<8x32xbf16>, vector<8x32xf32> -> vector<8x32xf32>
    %224 = arith.addf %203, %223 : vector<8x32xf32>
    %225 = arith.addf %132, %224 : vector<8x32xf32>
    %226 = vector.broadcast %32 : vector<1x32xf32> to vector<8x32xf32>
    %227 = arith.addf %225, %226 : vector<8x32xf32>
    %c1_75 = arith.constant 1 : index
    %c0_76 = arith.constant 0 : index
    %c0_77 = arith.constant 0 : index
    %228 = vector.load %arg12[%c1_75, %c0_76, %c0_77] : memref<2x8x32xf32, #tpu.memory_space<vmem>>, vector<1x8x32xf32>
    %229 = vector.shape_cast %228 : vector<1x8x32xf32> to vector<8x32xf32>
    %230 = vector.shape_cast %227 : vector<8x32xf32> to vector<1x8x32xf32>
    tpu.vector_store %arg12[%c1_75, %c0_76, %c0_77], %230 {strides = array<i32>} : memref<2x8x32xf32, #tpu.memory_space<vmem>>, vector<1x8x32xf32>,
    return
  }
  func.func @transform_0(%arg0: i32) -> (i32, i32, i32) {
    %c0_i32 = arith.constant 0 : i32
    %c0_i32_0 = arith.constant 0 : i32
    %c0_i32_1 = arith.constant 0 : i32
    return %arg0, %c0_i32, %c0_i32_0 : i32, i32, i32
  }
  func.func @transform_1(%arg0: i32) -> (i32, i32, i32) {
    %c0_i32 = arith.constant 0 : i32
    %c0_i32_0 = arith.constant 0 : i32
    %c0_i32_1 = arith.constant 0 : i32
    return %arg0, %c0_i32, %c0_i32_0 : i32, i32, i32
  }
  func.func @transform_2(%arg0: i32) -> (i32, i32, i32) {
    %c0_i32 = arith.constant 0 : i32
    %c0_i32_0 = arith.constant 0 : i32
    %c0_i32_1 = arith.constant 0 : i32
    return %arg0, %c0_i32, %c0_i32_0 : i32, i32, i32
  }
  func.func @transform_3(%arg0: i32) -> (i32, i32) {
    %c0_i32 = arith.constant 0 : i32
    %c0_i32_0 = arith.constant 0 : i32
    %c0_i32_1 = arith.constant 0 : i32
    return %c0_i32, %c0_i32_0 : i32, i32
  }
  func.func @transform_4(%arg0: i32) -> (i32, i32) {
    %c0_i32 = arith.constant 0 : i32
    %c0_i32_0 = arith.constant 0 : i32
    %c0_i32_1 = arith.constant 0 : i32
    return %c0_i32, %c0_i32_0 : i32, i32
  }
  func.func @transform_5(%arg0: i32) -> (i32, i32) {
    %c0_i32 = arith.constant 0 : i32
    %c0_i32_0 = arith.constant 0 : i32
    %c0_i32_1 = arith.constant 0 : i32
    return %c0_i32, %c0_i32_0 : i32, i32
  }
  func.func @transform_6(%arg0: i32) -> (i32, i32) {
    %c0_i32 = arith.constant 0 : i32
    %c0_i32_0 = arith.constant 0 : i32
    %c0_i32_1 = arith.constant 0 : i32
    return %c0_i32, %c0_i32_0 : i32, i32
  }
  func.func @transform_7(%arg0: i32) -> (i32, i32) {
    %c0_i32 = arith.constant 0 : i32
    %c0_i32_0 = arith.constant 0 : i32
    %c0_i32_1 = arith.constant 0 : i32
    return %c0_i32, %c0_i32_0 : i32, i32
  }
  func.func @transform_8(%arg0: i32) -> (i32, i32) {
    %c0_i32 = arith.constant 0 : i32
    %c0_i32_0 = arith.constant 0 : i32
    %c0_i32_1 = arith.constant 0 : i32
    return %c0_i32, %c0_i32_0 : i32, i32
  }
  func.func @transform_9(%arg0: i32) -> (i32, i32) {
    %c0_i32 = arith.constant 0 : i32
    %c0_i32_0 = arith.constant 0 : i32
    %c0_i32_1 = arith.constant 0 : i32
    return %c0_i32, %c0_i32_0 : i32, i32
  }
  func.func @transform_10(%arg0: i32) -> (i32, i32) {
    %c0_i32 = arith.constant 0 : i32
    %c0_i32_0 = arith.constant 0 : i32
    %c0_i32_1 = arith.constant 0 : i32
    return %c0_i32, %c0_i32_0 : i32, i32
  }
  func.func @transform_11(%arg0: i32) -> (i32, i32, i32) {
    %c0_i32 = arith.constant 0 : i32
    %c0_i32_0 = arith.constant 0 : i32
    %c0_i32_1 = arith.constant 0 : i32
    return %arg0, %c0_i32, %c0_i32_0 : i32, i32, i32
  }
}

</mosaic_0001>

<bundles_post_ra>
// kernel: tpu_custom_call.1
= control target key start
LH: loop header
LB: loop body
LE: loop exit
PB: predicated region body
PF: predicated region fallthrough
CT: control target
= control target key end

     0   :  { %16 = vsyncpa [#allocation3], 0  ;;  %s1438_s0 = inlined_call_operand.vmem [shape: f32[2,8,64], index: 0, kind: input, shape index: {}]   ;;  %s1439_s1 = inlined_call_operand.vmem [shape: f32[2,16,32], index: 1, kind: input, shape index: {}]   ;;  %s1440_s2 = inlined_call_operand.hbm [shape: f32[2,1,16], index: 2, kind: input, shape index: {}]   ;;  %s1441_s3 = inlined_call_operand.vmem [shape: bf16[64,32], index: 3, kind: input, shape index: {}]   ;;  %s1442_s4 = inlined_call_operand.vmem [shape: f32[1,32], index: 4, kind: input, shape index: {}]   ;;  %s1443_s5 = inlined_call_operand.hbm [shape: bf16[32,32], index: 5, kind: input, shape index: {}]   ;;  %s1444_s6 = inlined_call_operand.vmem [shape: f32[1,32], index: 6, kind: input, shape index: {}]   ;;  %s1445_s7 = inlined_call_operand.hbm [shape: bf16[32,64], index: 7, kind: input, shape index: {}]   ;;  %s1446_s8 = inlined_call_operand.vmem [shape: f32[1,64], index: 8, kind: input, shape index: {}]   ;;  %s1447_s9 = inlined_call_operand.hbm [shape: bf16[32,32], index: 9, kind: input, shape index: {}]   ;;  %s1448_s10 = inlined_call_operand.vmem [shape: f32[1,32], index: 10, kind: input, shape index: {}]   ;;  %s1449_s11 = inlined_call_operand.hbm [shape: f32[2,8,32], index: 11, kind: output, shape index: {}]  }
   0x1   :  { %17 = vsyncpa [#allocation6], 0 }
   0x2   :  { %18 = vsyncpa [#allocation9], 0  ;;  %s45_s19 = sshll.u32 %s1443_s5, 4  ;;  %s46_s19 = int_to_ptr.hbm [resolvable:$true] %s45_s19 }
   0x3   :  { %19 = vsyncpa [#allocation4], 0  ;;  %s1152_s20 = smov [#allocation5]   ;;  %s28_s24 = sshll.u32 %s1440_s2, 4  ;;  %s29_s24 = int_to_ptr.hbm [resolvable:$true] %s28_s24 }
   0x4   :  { %s47_s21 = sshll.u32 %s1152_s20, 4  ;;  %s1153_s25 = smov 64   ;;  %s48_s21 = int_to_ptr.vmem [resolvable:$true] %s47_s21 }
   0x5   :  { %s1154_s26 = smov 4   ;;  %s1155_s27 = smov [#allocation2]  }
   0x6   :  { %53 = dma.hbm_to_vmem [thread:$0]  %s46_s19, 256, %s48_s21, [#allocation6], %s1153_s25, %s1153_s25, %s1154_s26  }
   0x7   :  { %s30_s28 = sshll.u32 %s1155_s27, 4  ;;  %s1156_s29 = smov 16   ;;  %s31_s28 = int_to_ptr.vmem [resolvable:$true] %s30_s28 }
   0x8   :  { %s1157_s30 = smov 1   ;;  %s60_s13 = sshll.u32 %s1445_s7, 4  ;;  %s61_s13 = int_to_ptr.hbm [resolvable:$true] %s60_s13 }
   0x9   :  { %36 = dma.hbm_to_vmem [thread:$0]  %s29_s24, 32, %s31_s28, [#allocation3], %s1156_s29, %s1156_s29, %s1157_s30  }
   0xa   :  { %s1158_s14 = smov [#allocation7]   ;;  %s75_s17 = sshll.u32 %s1447_s9, 4  ;;  %s76_s17 = int_to_ptr.hbm [resolvable:$true] %s75_s17 }
   0xb   :  { %s62_s15 = sshll.u32 %s1158_s14, 4  ;;  %s1159_s18 = smov [#allocation8]   ;;  %s63_s15 = int_to_ptr.vmem [resolvable:$true] %s62_s15 }
   0xc   :  { %68 = dma.hbm_to_vmem [thread:$0]  %s61_s13, 256, %s63_s15, [#allocation6], %s1153_s25, %s1153_s25, %s1154_s26  }
   0xd   :  { %s77_s19 = sshll.u32 %s1159_s18, 4  ;;  %s78_s19 = int_to_ptr.vmem [resolvable:$true] %s77_s19 }
   0xe   :  { %83 = dma.hbm_to_vmem [thread:$0]  %s76_s17, 256, %s78_s19, [#allocation9], %s1153_s25, %s1153_s25, %s1154_s26  }
   0xf   :  { %1144 = dma.done.wait [#allocation3], 32  }
  0x10   :  { %1145 = vsyncadd [#allocation3], 4294967264 }
  0x11   :  { %1146 = dma.done.wait [#allocation6], 512  }
  0x12   :  { %1147 = vsyncadd [#allocation6], 4294966784 }
  0x13   :  { %1148 = dma.done.wait [#allocation9], 256  }
  0x14   :  { %1149 = vsyncadd [#allocation9], 4294967040  ;;  %v963_v0 = vld [vmem:[%s1441_s3 + $0x18] sm:$0xff]  ;;  %v962_v1 = vld [vmem:[%s1441_s3 + $0x10] sm:$0xff]  ;;  %vm189_vm0 = vcmask 261120   ;;  %vm150_vm1 = vcmask 523264  }
  0x15   :  { %158 = vmatpush.bf16.msra.mxu0 %v963_v0  ;;  %v967_v2 = vld [vmem:[#allocation7 + $0x8] sm:$0xff]  ;;  %v966_v3 = vld [vmem:[#allocation7] sm:$0xff]  ;;  %v109_v5 = vld [vmem:[%s1439_s1 + $0x8] sm:$0xff]  ;;  %vm274_vm2 = vcmask 64512   ;;  %s1163_s17 = smov 80   ;;  %vm294_vm3 = vcmask 130048  }
  0x16   :  { %v108_v4 = vld [vmem:[%s1439_s1] sm:$0xff]  ;;  %243 = vmatpush.bf16.msra.mxu2 %v967_v2  ;;  %v961_v6 = vld [vmem:[%s1441_s3 + $0x8] sm:$0xff]  ;;  %s1164_s18 = smov 104   ;;  %s1165_s19 = smov 96   ;;  %vm388_vm4 = vcmask 1043456  }
  0x17   :  { %v103_v7 = vld [vmem:[%s1438_s0] sm:$0xff]  ;;  %v104_v8 = vld [vmem:[%s1438_s0 + $0x8] sm:$0xff]  ;;  %v112_v9 = vpack.c.bf16 %v109_v5, %v108_v4  ;;  %s885_s27 = sshll.u32 %s1449_s11, 4  ;;  %s1168_s28 = smov 128   ;;  %s886_s27 = int_to_ptr.hbm [resolvable:$true] %s885_s27 }
  0x18   :  { %v105_v10 = vmax.f32 %v103_v7, 0.0  ;;  %v106_v11 = vmax.f32 %v104_v8, 0.0  ;;  %v960_v12 = vld [vmem:[%s1441_s3] sm:$0xff]  ;;  %v965_v14 = vld [vmem:[#allocation5 + $0x8] sm:$0xff]  ;;  %s1169_s29 = smov 8  }
  0x19   :  { %159 = vmatpush.bf16.msra.mxu0 %v962_v1  ;;  %199 = vmatpush.bf16.msra.mxu1 %v965_v14  ;;  %v964_v15 = vld [vmem:[#allocation5] sm:$0xff]  ;;  %v1270_v16 = vld [vmem:[%s1446_s8] ss:$0 sm:$0xff]  ;;  %s1161_s8 = smov 112   ;;  %v111_v14 = vld [vmem:[%s1439_s1 + $0x18] sm:$0xff] }
  0x1a   :  { %244 = vmatpush.bf16.msra.mxu2 %v966_v3  ;;  %v107_v13 = vpack.c.bf16 %v106_v11, %v105_v10  ;;  %v986_v20 = vld [vmem:[%s1442_s4] ss:$0 sm:$0xff]  ;;  %s1160_s4 = smov 120  }
  0x1b   :  { %v1296_v35 = vld [vmem:[%s1444_s6] ss:$0 sm:$0xff]  ;;  %s1162_s6 = smov 88  }
  0x1c   :  { %v1309_v50 = vld [vmem:[#allocation2] ss:$0 sm:$0xff] }
  0x1d   :  { %160 = vmatpush.bf16.msra.mxu0 %v961_v6  ;;  %934 = vmatmul.msk.bf16.vlgmr.msra.gmra.mxu2 %vm189_vm0, %v112_v9  ;;  %v260_v9 = vld [vmem:[#allocation8] sm:$0xf] }
  0x1e   :  { %200 = vmatpush.bf16.msra.mxu1 %v964_v15  ;;  %v1325_v11 = vsel %vm388_vm4, %v260_v9, 0 }
  0x1f   :  { %418 = vmatpush.bf16.msrb.mxu2 %v1325_v11 }
  0x21   :  { %161 = vmatpush.bf16.msra.mxu0 %v960_v12 }
  0x24   :  { %916 = vmatmul.msk.bf16.vlgmr.msra.gmra.mxu0 %vm150_vm1, %v107_v13  ;;  %v110_v13 = vld [vmem:[%s1439_s1 + $0x10] sm:$0xff]  ;;  %s1166_s1 = smov 72  }
  0x25   :  { %v113_v15 = vpack.c.bf16 %v111_v14, %v110_v13 }
  0x2d   :  { %935 = vmatmul.msk.bf16.gmra.mxu2 %vm189_vm0, %v113_v15 }
  0xa0   :  { %v246_v18 = vpop.f32.mrf.mxu2 }
  0xa1   :  { %v163_v17 = vpop.f32.mrf.mxu0  ;;  %v247_v19 = vadd.f32 %v1270_v16, %v246_v18 }
  0xa2   :  { %v1276_v24 = vadd.f32 %v986_v20, %v163_v17 }
  0xa3   :  { %v256_v21 = vpack.c.bf16 %v247_v19, %v247_v19 }
  0xa5   :  { %v271_v28 = vunpack.c.l.b16 %v256_v21 }
  0xa8   :  { %v248_v23 = vpop.f32.mrf.mxu2 }
  0xa9   :  { %v165_v22 = vpop.f32.mrf.mxu0  ;;  %v249_v26 = vadd.f32 %v1270_v16, %v248_v23 }
  0xaa   :  { %v1278_v25 = vadd.f32 %v986_v20, %v165_v22 }
  0xab   :  { %v257_v29 = vpack.c.bf16 %v249_v26, %v249_v26 }
  0xac   :  { %v168_v27 = vpack.c.bf16 %v1278_v25, %v1276_v24 }
  0xad   :  { %v272_v30 = vunpack.c.l.b16 %v257_v29 }
  0xae   :  { %925 = vmatmul.msk.bf16.vlgmr.msra.gmra.mxu1 %vm189_vm0, %v168_v27 }
  0xaf   :  { %v1284_v31 = vpack.c.b16 %v272_v30, %v271_v28 }
  0xb1   :  { %332 = vrot.lane.b32.xlu0 %v1284_v31, %s1160_s4  ;;  %426 = vrot.lane.b32.xlu1 %v1284_v31, %s1161_s8  ;;  %v279_v32 = vsel %vm274_vm2, %v1284_v31, 0 }
  0xb2   :  { %288 = vmatpush.bf16.xpose.msra.mxu3 %v279_v32  ;;  %v261_v32 = vld [vmem:[#allocation8 + $0x4] sm:$0xf] }
 0x123   :  { %v333_v33 = vpop.permute.xlu0 %332  ;;  %v427_v38 = vpop.permute.xlu1 %426 }
 0x124   :  { %v338_v34 = vsel %vm274_vm2, %v333_v33, 0  ;;  %v432_v41 = vsel %vm274_vm2, %v427_v38, 0  ;;  %v390_v33 = vsel %vm388_vm4, %v261_v32, 0 }
 0x125   :  { %347 = vmatpush.bf16.xpose.msrb.mxu3 %v338_v34 }
 0x12b   :  { %v202_v36 = vpop.f32.mrf.mxu1 }
 0x12c   :  { %v203_v37 = vadd.f32 %v1296_v35, %v202_v36  ;;  %v251_v36 = vpop.f32.mrf.mxu2 }
 0x12d   :  { %v252_v38 = vadd.f32 %v1270_v16, %v251_v36 }
 0x12e   :  { %v207_v39 = vmul.f32 0.35355338, %v203_v37 }
 0x130   :  { %v209_v40 = vpack.c.bf16 %v207_v39, %v207_v39  ;;  %v258_v39 = vpack.c.bf16 %v252_v38, %v252_v38 }
 0x132   :  { %v328_v42 = vunpack.c.l.b16 %v209_v40  ;;  %936 = vmatmul.msk.bf16.vlgmr.msra.gmra.mxu3 %vm274_vm2, %v209_v40 }
 0x133   :  { %441 = vmatpush.bf16.xpose.msra.mxu3 %v432_v41 }
 0x134   :  { %v329_v43 = vpack.c.b16 %v328_v42, %v328_v42  ;;  %v253_v41 = vpop.f32.mrf.mxu2 }
 0x136   :  { %424 = vrot.lane.b32.xlu1 %v329_v43, %s1161_s8  ;;  %330 = vrot.lane.b32.xlu0 %v329_v43, %s1160_s4 }
 0x13e   :  { %365 = vrot.lane.b32.xlu1 %v1284_v31, %s1162_s6 }
 0x146   :  { %459 = vrot.lane.b32.xlu1 %v1284_v31, %s1163_s17 }
 0x1a8   :  { %v425_v44 = vpop.permute.xlu1 %424  ;;  %v331_v45 = vpop.permute.xlu0 %330 }
 0x1a9   :  { %938 = vmatmul.msk.bf16.vlgmr.msrb.gmra.mxu3 %vm274_vm2, %v331_v45 }
 0x1b0   :  { %v366_v46 = vpop.permute.xlu1 %365 }
 0x1b1   :  { %378 = vmatpush.bf16.msrb.mxu0 %v366_v46 }
 0x1b5   :  { %v290_v47 = vpop.f32.mrf.mxu3 }
 0x1b6   :  { %v291_v5 = vadd.f32 %v1309_v50, %v290_v47 }
 0x1b8   :  { %v460_v48 = vpop.permute.xlu1 %459  ;;  %v295_v6 = vsel %vm294_vm3, %v291_v5, -inf }
 0x1b9   :  { %942 = vmatmul.msk.bf16.vlgmr.msra.gmra.mxu3 %vm274_vm2, %v425_v44  ;;  %472 = vmatpush.bf16.msra.mxu0 %v460_v48  ;;  %v587_v44 = vunpack.c.l.b16 %v258_v39 }
 0x1bd   :  { %v292_v49 = vpop.f32.mrf.mxu3 }
 0x1be   :  { %v262_v49 = vld [vmem:[#allocation8 + $0x8] sm:$0xf] }
 0x22c   :  { %v349_v51 = vpop.f32.mrf.mxu3 }
 0x22d   :  { %v350_v52 = vadd.f32 %v1309_v50, %v349_v51 }
 0x22f   :  { %v353_v53 = vsel %vm294_vm3, %v350_v52, -inf }
 0x230   :  { %354 = vmax.xlane.f32.xlu2 %v353_v53 }
 0x234   :  { %v351_v54 = vpop.f32.mrf.mxu3 }
 0x235   :  { %v483_v54 = vsel %vm388_vm4, %v262_v49, 0 }
 0x23c   :  { %v443_v55 = vpop.f32.mrf.mxu3 }
 0x23d   :  { %v444_v56 = vadd.f32 %v1309_v50, %v443_v55 }
 0x23f   :  { %v447_v57 = vsel %vm294_vm3, %v444_v56, -inf }
 0x240   :  { %448 = vmax.xlane.f32.xlu2 %v447_v57  ;;  %v204_v57 = vpop.f32.mrf.mxu1 }
 0x244   :  { %v445_v58 = vpop.f32.mrf.mxu3 }
 0x245   :  { %v205_v58 = vadd.f32 %v1296_v35, %v204_v57 }
 0x2a3   :  { %v355_v59 = vpop.xlane.xlu2 %354 }
 0x2a4   :  { %v356_v60 = vsub.f32 %v350_v52, %v355_v59  ;;  %v208_v59 = vmul.f32 0.35355338, %v205_v58 }
 0x2a6   :  { %v357_v61 = vmul.f32 1.442695, %v356_v60  ;;  %v210_v60 = vpack.c.bf16 %v208_v59, %v208_v59 }
 0x2a8   :  { %992 = vpow2.f32 %v357_v61 }
 0x2ae   :  { %v993_v62 = vpop.eup %992 }
 0x2af   :  { %v359_v63 = vsel %vm294_vm3, %v993_v62, 0.0 }
 0x2b0   :  { %360 = vadd.xlane.f32.xlu0 %v359_v63 }
 0x2b3   :  { %v449_v0 = vpop.xlane.xlu2 %448 }
 0x2b4   :  { %v450_v1 = vsub.f32 %v444_v56, %v449_v0 }
 0x2b6   :  { %v451_v2 = vmul.f32 1.442695, %v450_v1 }
 0x2b8   :  { %994 = vpow2.f32 %v451_v2 }
 0x2be   :  { %v995_v3 = vpop.eup %994 }
 0x2bf   :  { %v453_v4 = vsel %vm294_vm3, %v995_v3, 0.0 }
 0x2c0   :  { %454 = vadd.xlane.f32.xlu2 %v453_v4 }
 0x2c4   :  { %499 = vrot.lane.b32.xlu0 %v329_v43, %s1164_s18  ;;  %v254_v43 = vadd.f32 %v1270_v16, %v253_v41 }
 0x2c6   :  { %v259_v45 = vpack.c.bf16 %v254_v43, %v254_v43 }
 0x2c8   :  { %296 = vmax.xlane.f32.xlu2 %v295_v6  ;;  %v588_v46 = vunpack.c.l.b16 %v259_v45 }
 0x2ca   :  { %v1342_v48 = vpack.c.b16 %v588_v46, %v587_v44 }
 0x2cc   :  { %621 = vrot.lane.b32.xlu0 %v1342_v48, %s1165_s19  ;;  %v594_v16 = vsel %vm274_vm2, %v1342_v48, 0 }
 0x2e0   :  { %307 = vrot.lane.b32.xlu2 %v1284_v31, %s1165_s19 }
 0x2e8   :  { %501 = vrot.lane.b32.xlu2 %v1284_v31, %s1164_s18 }
 0x323   :  { %v361_v7 = vpop.xlane.xlu0 %360 }
 0x324   :  { %996 = vrcp.f32 %v361_v7 }
 0x32a   :  { %v997_v8 = vpop.eup %996 }
 0x32b   :  { %v363_v10 = vmul.f32 %v997_v8, %v993_v62 }
 0x32d   :  { %v364_v12 = vpack.c.bf16 %v363_v10, %v363_v10  ;;  %v642_v10 = vunpack.c.l.b16 %v210_v60 }
 0x32f   :  { %939 = vmatmul.msk.bf16.vlgmr.msrb.gmra.mxu0 %vm294_vm3, %v364_v12  ;;  %v643_v12 = vpack.c.b16 %v642_v10, %v642_v10 }
 0x333   :  { %v455_v17 = vpop.xlane.xlu2 %454 }
 0x334   :  { %998 = vrcp.f32 %v455_v17 }
 0x336   :  { %v500_v61 = vpop.permute.xlu0 %499 }
 0x33a   :  { %v999_v18 = vpop.eup %998 }
 0x33b   :  { %v457_v19 = vmul.f32 %v999_v18, %v995_v3  ;;  %v297_v20 = vpop.xlane.xlu2 %296 }
 0x33c   :  { %v298_v21 = vsub.f32 %v291_v5, %v297_v20  ;;  %v1361_v5 = vld [vmem:[#allocation2 + $0x1] ss:$0 sm:$0xff] }
 0x33d   :  { %v458_v22 = vpack.c.bf16 %v457_v19, %v457_v19 }
 0x33e   :  { %v299_v23 = vmul.f32 1.442695, %v298_v21  ;;  %v622_v0 = vpop.permute.xlu0 %621 }
 0x33f   :  { %943 = vmatmul.msk.bf16.vlgmr.msra.gmra.mxu0 %vm294_vm3, %v458_v22 }
 0x340   :  { %1000 = vpow2.f32 %v299_v23 }
 0x343   :  { %v308_v26 = vpop.permute.xlu2 %307 }
 0x344   :  { %320 = vmatpush.bf16.msrb.mxu1 %v308_v26 }
 0x346   :  { %v1001_v27 = vpop.eup %1000 }
 0x347   :  { %v301_v28 = vsel %vm294_vm3, %v1001_v27, 0.0 }
 0x348   :  { %302 = vadd.xlane.f32.xlu1 %v301_v28  ;;  %399 = vmatpush.bf16.msra.mxu1 %v390_v33 }
 0x34b   :  { %v502_v29 = vpop.permute.xlu2 %501 }
 0x34c   :  { %v507_v30 = vsel %vm274_vm2, %v502_v29, 0 }
 0x34d   :  { %516 = vmatpush.bf16.xpose.msra.mxu2 %v507_v30 }
 0x3ac   :  { %v380_v34 = vpop.f32.mrf.mxu0 }
 0x3ad   :  { %v384_v55 = vpack.c.bf16 %v380_v34, %v380_v34 }
 0x3b4   :  { %v382_v37 = vpop.f32.mrf.mxu0 }
 0x3bb   :  { %v303_v40 = vpop.xlane.xlu1 %302 }
 0x3bc   :  { %1002 = vrcp.f32 %v303_v40  ;;  %v474_v42 = vpop.f32.mrf.mxu0 }
 0x3bd   :  { %v478_v56 = vpack.c.bf16 %v474_v42, %v474_v42 }
 0x3c2   :  { %v1003_v47 = vpop.eup %1002 }
 0x3c3   :  { %v305_v51 = vmul.f32 %v1003_v47, %v1001_v27 }
 0x3c4   :  { %v476_v52 = vpop.f32.mrf.mxu0 }
 0x3c5   :  { %v306_v53 = vpack.c.bf16 %v305_v51, %v305_v51 }
 0x3c7   :  { %937 = vmatmul.msk.bf16.vlgmr.msrb.gmra.mxu1 %vm294_vm3, %v306_v53 }
 0x3c8   :  { %492 = vmatpush.bf16.msrb.mxu1 %v483_v54 }
 0x3d7   :  { %940 = vmatmul.msk.bf16.vlgmr.msra.gmra.mxu1 %vm274_vm2, %v384_v55 }
 0x3d8   :  { %603 = vmatpush.bf16.xpose.msra.mxu1 %v594_v16 }
 0x3e7   :  { %944 = vmatmul.msk.bf16.vlgmr.msrb.gmra.mxu1 %vm274_vm2, %v478_v56 }
 0x3e8   :  { %709 = vmatpush.bf16.msrb.mxu1 %v390_v33 }
 0x3f7   :  { %948 = vmatmul.msk.bf16.vlgmr.msra.gmra.mxu1 %vm274_vm2, %v210_v60 }
 0x3f8   :  { %796 = vmatpush.bf16.msra.mxu1 %v483_v54  ;;  %v263_v54 = vld [vmem:[#allocation8 + $0xc] sm:$0xf] }
 0x3f9   :  { %v1392_v55 = vsel %vm388_vm4, %v263_v54, 0 }
 0x3fa   :  { %567 = vmatpush.bf16.msrb.mxu0 %v1392_v55 }
 0x444   :  { %v322_v62 = vpop.f32.mrf.mxu1 }
 0x445   :  { %v326_v63 = vpack.c.bf16 %v322_v62, %v322_v62 }
 0x447   :  { %941 = vmatmul.msk.bf16.vlgmr.msrb.gmra.mxu2 %vm274_vm2, %v326_v63 }
 0x448   :  { %634 = vmatpush.bf16.msrb.mxu2 %v622_v0 }
 0x44c   :  { %v324_v1 = vpop.f32.mrf.mxu1 }
 0x454   :  { %v1355_v2 = vpop.f32.mrf.mxu1 }
 0x457   :  { %945 = vmatmul.msk.bf16.vlgmr.msra.gmra.mxu2 %vm274_vm2, %v500_v61 }
 0x458   :  { %725 = vmatpush.bf16.msra.mxu2 %v1325_v11 }
 0x45c   :  { %v403_v35 = vpop.f32.mrf.mxu1 }
 0x464   :  { %v1359_v3 = vpop.f32.mrf.mxu1 }
 0x46c   :  { %v496_v4 = vpop.f32.mrf.mxu1 }
 0x474   :  { %v605_v6 = vpop.f32.mrf.mxu1 }
 0x475   :  { %v606_v7 = vadd.f32 %v1361_v5, %v605_v6 }
 0x477   :  { %v609_v8 = vsel %vm294_vm3, %v606_v7, -inf }
 0x478   :  { %610 = vmax.xlane.f32.xlu2 %v609_v8 }
 0x47c   :  { %v607_v9 = vpop.f32.mrf.mxu1 }
 0x490   :  { %646 = vrot.lane.b32.xlu2 %v1342_v48, %s1160_s4 }
 0x498   :  { %803 = vrot.lane.b32.xlu2 %v643_v12, %s1164_s18 }
 0x4ca   :  { %v1368_v11 = vpop.f32.mrf.mxu2 }
 0x4cb   :  { %v421_v10 = vadd.f32 %v1368_v11, %v1355_v2 }
 0x4d2   :  { %v422_v13 = vpop.f32.mrf.mxu2 }
 0x4da   :  { %v518_v14 = vpop.f32.mrf.mxu2 }
 0x4db   :  { %v519_v22 = vadd.f32 %v1309_v50, %v518_v14 }
 0x4dd   :  { %v522_v23 = vsel %vm294_vm3, %v519_v22, -inf }
 0x4e2   :  { %v520_v15 = vpop.f32.mrf.mxu2 }
 0x4e3   :  { %v1412_v15 = vld [vmem:[%s1448_s10] ss:$0 sm:$0xff]  ;;  %s1167_s10 = smov [#allocation10]  }
 0x4e4   :  { %s883_s24 = sshll.u32 %s1167_s10, 4  ;;  %s884_s24 = int_to_ptr.vmem [resolvable:$true] %s883_s24 }
 0x4eb   :  { %v611_v17 = vpop.xlane.xlu2 %610 }
 0x4ec   :  { %v612_v18 = vsub.f32 %v606_v7, %v611_v17 }
 0x4ee   :  { %v613_v19 = vmul.f32 1.442695, %v612_v18 }
 0x4f0   :  { %1004 = vpow2.f32 %v613_v19 }
 0x4f3   :  { %v647_v34 = vpop.permute.xlu2 %646 }
 0x4f4   :  { %v652_v37 = vsel %vm274_vm2, %v647_v34, 0 }
 0x4f6   :  { %v1005_v20 = vpop.eup %1004 }
 0x4f7   :  { %v615_v21 = vsel %vm294_vm3, %v1005_v20, 0.0 }
 0x4f8   :  { %616 = vadd.xlane.f32.xlu1 %v615_v21 }
 0x4fb   :  { %v804_v52 = vpop.permute.xlu2 %803 }
 0x500   :  { %523 = vmax.xlane.f32.xlu1 %v522_v23 }
 0x519   :  { %534 = vrot.lane.b32.xlu1 %v1284_v31, %s1166_s1 }
 0x521   :  { %644 = vrot.lane.b32.xlu1 %v643_v12, %s1160_s4 }
 0x529   :  { %805 = vrot.lane.b32.xlu1 %v1342_v48, %s1164_s18 }
 0x531   :  { %731 = vrot.lane.b32.xlu1 %v643_v12, %s1161_s8  ;;  %v498_v12 = vadd.f32 %v1359_v3, %v421_v10 }
 0x56b   :  { %v617_v26 = vpop.xlane.xlu1 %616 }
 0x56c   :  { %1006 = vrcp.f32 %v617_v26 }
 0x572   :  { %v1007_v27 = vpop.eup %1006 }
 0x573   :  { %v619_v28 = vmul.f32 %v1007_v27, %v1005_v20  ;;  %v524_v29 = vpop.xlane.xlu1 %523 }
 0x574   :  { %v525_v50 = vsub.f32 %v519_v22, %v524_v29 }
 0x575   :  { %v620_v30 = vpack.c.bf16 %v619_v28, %v619_v28 }
 0x576   :  { %v526_v32 = vmul.f32 1.442695, %v525_v50 }
 0x577   :  { %949 = vmatmul.msk.bf16.vlgmr.msrb.gmra.mxu2 %vm294_vm3, %v620_v30 }
 0x578   :  { %1008 = vpow2.f32 %v526_v32 }
 0x57e   :  { %v1009_v33 = vpop.eup %1008 }
 0x57f   :  { %v528_v31 = vsel %vm294_vm3, %v1009_v33, 0.0 }
 0x580   :  { %529 = vadd.xlane.f32.xlu0 %v528_v31 }
 0x58b   :  { %v535_v36 = vpop.permute.xlu1 %534 }
 0x58c   :  { %547 = vmatpush.bf16.msrb.mxu3 %v535_v36 }
 0x590   :  { %661 = vmatpush.bf16.xpose.msra.mxu3 %v652_v37 }
 0x593   :  { %v645_v38 = vpop.permute.xlu1 %644 }
 0x594   :  { %733 = vrot.lane.b32.xlu0 %v1342_v48, %s1161_s8 }
 0x59b   :  { %v806_v39 = vpop.permute.xlu1 %805 }
 0x59c   :  { %v811_v40 = vsel %vm274_vm2, %v806_v39, 0 }
 0x59d   :  { %820 = vmatpush.bf16.xpose.msrb.mxu2 %v811_v40 }
 0x5a3   :  { %v732_v53 = vpop.permute.xlu1 %731 }
 0x5f3   :  { %v530_v41 = vpop.xlane.xlu0 %529 }
 0x5f4   :  { %1010 = vrcp.f32 %v530_v41 }
 0x5fa   :  { %v1011_v42 = vpop.eup %1010  ;;  %v636_v43 = vpop.f32.mrf.mxu2 }
 0x5fb   :  { %v532_v44 = vmul.f32 %v1011_v42, %v1009_v33  ;;  %v640_v45 = vpack.c.bf16 %v636_v43, %v636_v43 }
 0x5fd   :  { %v533_v46 = vpack.c.bf16 %v532_v44, %v532_v44  ;;  %953 = vmatmul.msk.bf16.vlgmr.msra.gmra.mxu2 %vm274_vm2, %v640_v45 }
 0x5ff   :  { %946 = vmatmul.msk.bf16.vlgmr.msrb.gmra.mxu3 %vm294_vm3, %v533_v46 }
 0x602   :  { %v638_v47 = vpop.f32.mrf.mxu2 }
 0x606   :  { %v734_v49 = vpop.permute.xlu0 %733 }
 0x607   :  { %v739_v51 = vsel %vm274_vm2, %v734_v49, 0 }
 0x608   :  { %748 = vmatpush.bf16.xpose.msrb.mxu3 %v739_v51 }
 0x60d   :  { %957 = vmatmul.msk.bf16.vlgmr.msrb.gmra.mxu2 %vm274_vm2, %v804_v52 }
 0x60f   :  { %950 = vmatmul.msk.bf16.vlgmr.msra.gmra.mxu3 %vm274_vm2, %v645_v38 }
 0x61f   :  { %954 = vmatmul.msk.bf16.vlgmr.msrb.gmra.mxu3 %vm274_vm2, %v732_v53 }
 0x680   :  { %v1395_v16 = vpop.f32.mrf.mxu2 }
 0x682   :  { %v549_v56 = vpop.f32.mrf.mxu3 }
 0x683   :  { %v553_v57 = vpack.c.bf16 %v549_v56, %v549_v56 }
 0x685   :  { %947 = vmatmul.msk.bf16.vlgmr.msrb.gmra.mxu0 %vm274_vm2, %v553_v57 }
 0x688   :  { %v729_v58 = vpop.f32.mrf.mxu2 }
 0x68a   :  { %v551_v59 = vpop.f32.mrf.mxu3 }
 0x690   :  { %v822_v60 = vpop.f32.mrf.mxu2 }
 0x691   :  { %v823_v61 = vadd.f32 %v1361_v5, %v822_v60 }
 0x692   :  { %v663_v62 = vpop.f32.mrf.mxu3 }
 0x693   :  { %v664_v63 = vadd.f32 %v1361_v5, %v663_v62  ;;  %v826_v0 = vsel %vm294_vm3, %v823_v61, -inf }
 0x694   :  { %827 = vmax.xlane.f32.xlu1 %v826_v0 }
 0x695   :  { %v667_v1 = vsel %vm294_vm3, %v664_v63, -inf }
 0x696   :  { %668 = vmax.xlane.f32.xlu2 %v667_v1 }
 0x698   :  { %v824_v35 = vpop.f32.mrf.mxu2 }
 0x69a   :  { %v665_v4 = vpop.f32.mrf.mxu3 }
 0x6a2   :  { %v750_v6 = vpop.f32.mrf.mxu3 }
 0x6a3   :  { %v751_v7 = vadd.f32 %v1361_v5, %v750_v6 }
 0x6a5   :  { %v754_v8 = vsel %vm294_vm3, %v751_v7, -inf }
 0x6a6   :  { %755 = vmax.xlane.f32.xlu0 %v754_v8 }
 0x6aa   :  { %v752_v9 = vpop.f32.mrf.mxu3 }
 0x6ad   :  { %679 = vrot.lane.b32.xlu1 %v1342_v48, %s1162_s6 }
 0x702   :  { %v569_v13 = vpop.f32.mrf.mxu0 }
 0x703   :  { %v573_v14 = vadd.f32 %v569_v13, %v498_v12 }
 0x705   :  { %v574_v5 = vadd.f32 %v573_v14, %v1276_v24 }
 0x707   :  { %v578_v17 = vadd.f32 %v1412_v15, %v574_v5  ;;  %v828_v18 = vpop.xlane.xlu1 %827 }
 0x708   :  { %v829_v2 = vsub.f32 %v823_v61, %v828_v18 }
 0x709   :  { %579 = vst.msk [vmem:[#allocation10] sm:$0xff] %vm189_vm0, %v578_v17  ;;  %v669_v19 = vpop.xlane.xlu2 %668 }
 0x70a   :  { %v670_v20 = vsub.f32 %v664_v63, %v669_v19  ;;  %v571_v21 = vpop.f32.mrf.mxu0  ;;  %v830_v3 = vmul.f32 1.442695, %v829_v2 }
 0x70c   :  { %v671_v11 = vmul.f32 1.442695, %v670_v20 }
 0x70e   :  { %1012 = vpow2.f32 %v671_v11 }
 0x70f   :  { %1014 = vpow2.f32 %v830_v3 }
 0x714   :  { %v1013_v22 = vpop.eup %1012 }
 0x715   :  { %v673_v23 = vsel %vm294_vm3, %v1013_v22, 0.0  ;;  %v1015_v27 = vpop.eup %1014 }
 0x716   :  { %674 = vadd.xlane.f32.xlu2 %v673_v23  ;;  %v832_v29 = vsel %vm294_vm3, %v1015_v27, 0.0 }
 0x719   :  { %v756_v26 = vpop.xlane.xlu0 %755 }
 0x71a   :  { %v757_v24 = vsub.f32 %v751_v7, %v756_v26 }
 0x71c   :  { %v758_v28 = vmul.f32 1.442695, %v757_v24 }
 0x71e   :  { %1016 = vpow2.f32 %v758_v28  ;;  %833 = vadd.xlane.f32.xlu2 %v832_v29 }
 0x71f   :  { %v680_v50 = vpop.permute.xlu1 %679 }
 0x720   :  { %692 = vmatpush.bf16.msra.mxu0 %v680_v50 }
 0x724   :  { %v1017_v30 = vpop.eup %1016 }
 0x725   :  { %v760_v32 = vsel %vm294_vm3, %v1017_v30, 0.0 }
 0x726   :  { %761 = vadd.xlane.f32.xlu0 %v760_v32 }
 0x736   :  { %838 = vrot.lane.b32.xlu2 %v1342_v48, %s1166_s1 }
 0x73a   :  { %766 = vrot.lane.b32.xlu0 %v1342_v48, %s1163_s17 }
 0x789   :  { %v675_v33 = vpop.xlane.xlu2 %674 }
 0x78a   :  { %1018 = vrcp.f32 %v675_v33 }
 0x790   :  { %v1019_v31 = vpop.eup %1018 }
 0x791   :  { %v677_v34 = vmul.f32 %v1019_v31, %v1013_v22  ;;  %v834_v36 = vpop.xlane.xlu2 %833 }
 0x792   :  { %1020 = vrcp.f32 %v834_v36 }
 0x793   :  { %v678_v37 = vpack.c.bf16 %v677_v34, %v677_v34 }
 0x795   :  { %951 = vmatmul.msk.bf16.vlgmr.msra.gmra.mxu0 %vm294_vm3, %v678_v37 }
 0x798   :  { %v1021_v38 = vpop.eup %1020 }
 0x799   :  { %v836_v39 = vmul.f32 %v1021_v38, %v1015_v27  ;;  %v839_v40 = vpop.permute.xlu2 %838  ;;  %v762_v42 = vpop.xlane.xlu0 %761 }
 0x79a   :  { %851 = vmatpush.bf16.msra.mxu3 %v839_v40  ;;  %1022 = vrcp.f32 %v762_v42 }
 0x79b   :  { %v837_v41 = vpack.c.bf16 %v836_v39, %v836_v39 }
 0x79d   :  { %958 = vmatmul.msk.bf16.vlgmr.msra.gmra.mxu3 %vm294_vm3, %v837_v41 }
 0x7a0   :  { %v1023_v43 = vpop.eup %1022 }
 0x7a1   :  { %v764_v48 = vmul.f32 %v1023_v43, %v1017_v30 }
 0x7a3   :  { %v765_v45 = vpack.c.bf16 %v764_v48, %v764_v48 }
 0x7ac   :  { %v767_v44 = vpop.permute.xlu0 %766 }
 0x7ad   :  { %779 = vmatpush.bf16.msrb.mxu0 %v767_v44 }
 0x7b0   :  { %955 = vmatmul.msk.bf16.vlgmr.msrb.gmra.mxu0 %vm294_vm3, %v765_v45 }
 0x7b1   :  { %868 = vmatpush.bf16.msra.mxu0 %v1392_v55 }
 0x812   :  { %v694_v46 = vpop.f32.mrf.mxu0 }
 0x813   :  { %v698_v47 = vpack.c.bf16 %v694_v46, %v694_v46 }
 0x815   :  { %952 = vmatmul.msk.bf16.vlgmr.msrb.gmra.mxu1 %vm274_vm2, %v698_v47 }
 0x81a   :  { %v696_v49 = vpop.f32.mrf.mxu0 }
 0x820   :  { %v853_v51 = vpop.f32.mrf.mxu3 }
 0x821   :  { %v857_v52 = vpack.c.bf16 %v853_v51, %v853_v51 }
 0x823   :  { %959 = vmatmul.msk.bf16.vlgmr.msra.gmra.mxu0 %vm274_vm2, %v857_v52 }
 0x828   :  { %v855_v53 = vpop.f32.mrf.mxu3 }
 0x82d   :  { %v781_v54 = vpop.f32.mrf.mxu0 }
 0x82e   :  { %v785_v56 = vpack.c.bf16 %v781_v54, %v781_v54 }
 0x830   :  { %956 = vmatmul.msk.bf16.vlgmr.msra.gmra.mxu1 %vm274_vm2, %v785_v56 }
 0x835   :  { %v783_v57 = vpop.f32.mrf.mxu0 }
 0x892   :  { %v711_v58 = vpop.f32.mrf.mxu1 }
 0x893   :  { %v728_v61 = vadd.f32 %v1395_v16, %v711_v58 }
 0x89a   :  { %v713_v59 = vpop.f32.mrf.mxu1 }
 0x8a0   :  { %v870_v55 = vpop.f32.mrf.mxu0 }
 0x8a8   :  { %v872_v60 = vpop.f32.mrf.mxu0 }
 0x8ad   :  { %v798_v62 = vpop.f32.mrf.mxu1 }
 0x8ae   :  { %v802_v63 = vadd.f32 %v798_v62, %v728_v61 }
 0x8b0   :  { %v874_v0 = vadd.f32 %v870_v55, %v802_v63 }
 0x8b2   :  { %v875_v1 = vadd.f32 %v874_v0, %v1278_v25 }
 0x8b4   :  { %v876_v35 = vadd.f32 %v1412_v15, %v875_v1 }
 0x8b5   :  { %v800_v4 = vpop.f32.mrf.mxu1 }
 0x8b6   :  { %878 = vst.msk [vmem:[#allocation10 + $0x8] sm:$0xff] %vm189_vm0, %v876_v35 }
 0x8b7   :  { %891 = dma.vmem_to_hbm [thread:$0]  %s884_s24, 256, %s886_s27, [#allocation4], %s1168_s28, %s1168_s28, %s1169_s29  }
 0x8b8   :  { %1150 = dma.done.wait [#allocation4], 256  }
 0x8b9   :  { %1151 = vsyncadd [#allocation4], 4294967040 }
 0x8ba   :  { %896 = vsyncpa [#allocation3], 1 }
 0x8bb   :  { %897 = vsyncpa [#allocation6], 1 }
 0x8bc   :  { %898 = vsyncpa [#allocation9], 1 }
 0x8bd   :  { %899 = vsyncpa [#allocation4], 1 }

</bundles_post_ra>
